<compile_context>
chip_gen: v7x
topology: tpu7x:2x2x1
jax: 0.10.0
libtpu: 0.0.40
codegen_flags: <defaults>
</compile_context>

<pallas_src>
import functools

import jax
import jax.numpy as jnp
from jax.experimental import pallas as pl
from jax.experimental.pallas import tpu as pltpu


# --------------------------------- kernels ----------------------------------


def _bn_fused_kernel(x_ref, wb_ref, o_ref, *, inv_m, eps):
    """Single pass: stats + normalize. x_ref/o_ref: (N, tc, L); wb_ref: (tc, 2)."""
    xf = x_ref[...].astype(jnp.float32)                   # (N, tc, L)

    # Reduce batch axis first (VPU adds), then one lane-axis (XLU) reduce each.
    p1 = jnp.sum(xf, axis=0)                              # (tc, L)
    p2 = jnp.sum(xf * xf, axis=0)                         # (tc, L)
    s1 = jnp.sum(p1, axis=-1, keepdims=True)              # (tc, 1)
    s2 = jnp.sum(p2, axis=-1, keepdims=True)              # (tc, 1)

    mean = s1 * inv_m
    var = jnp.maximum(s2 * inv_m - mean * mean, 0.0)      # clamp f32 cancellation
    inv_std = jax.lax.rsqrt(var + eps)

    scale = wb_ref[:, 0:1] * inv_std                      # (tc, 1)
    shift = wb_ref[:, 1:2] - mean * scale                 # (tc, 1)

    # Re-index x_ref so the f32 upcast fuses per use (no reused full-block f32
    # temp for sub-32-bit inputs; a no-op for f32 inputs).
    o_ref[...] = (x_ref[...].astype(jnp.float32) * scale[None]
                  + shift[None]).astype(o_ref.dtype)


def _bn_stats_kernel(x_ref, stat_ref, s1_ref, s2_ref, *, inv_m, eps, tl, l_total,
                     need_mask):
    """Two-phase path, phase 1: accumulate per-channel sums over L tiles."""
    j = pl.program_id(1)

    @pl.when(j == 0)
    def _init():
        s1_ref[...] = jnp.zeros_like(s1_ref)
        s2_ref[...] = jnp.zeros_like(s2_ref)

    x = x_ref[...].astype(jnp.float32)                    # (N, tc, tl)
    if need_mask:
        lane = jax.lax.broadcasted_iota(jnp.int32, x.shape, 2)
        x = jnp.where(j * tl + lane < l_total, x, 0.0)    # zero padded L lanes

    p1 = jnp.sum(x, axis=0)                               # (tc, tl)
    p2 = jnp.sum(x * x, axis=0)
    s1_ref[...] += jnp.sum(p1, axis=-1, keepdims=True)    # (tc, 1)
    s2_ref[...] += jnp.sum(p2, axis=-1, keepdims=True)

    @pl.when(j == pl.num_programs(1) - 1)
    def _finalize():
        mean = s1_ref[...] * inv_m
        var = jnp.maximum(s2_ref[...] * inv_m - mean * mean, 0.0)
        inv_std = jax.lax.rsqrt(var + eps)
        stat_ref[:, 0:1] = mean
        stat_ref[:, 1:2] = inv_std


def _bn_normalize_kernel(x_ref, stat_ref, wb_ref, o_ref):
    """Two-phase path, phase 2: out = x * (w*inv_std) + (b - mean*w*inv_std)."""
    mean = stat_ref[:, 0:1]                               # (tc, 1)
    inv_std = stat_ref[:, 1:2]
    scale = wb_ref[:, 0:1] * inv_std
    shift = wb_ref[:, 1:2] - mean * scale
    o_ref[...] = (x_ref[...].astype(jnp.float32) * scale[None]
                  + shift[None]).astype(o_ref.dtype)


# --------------------------------- wrapper -----------------------------------


def _default_budgets():
    """Generation-aware VMEM budgets (v7x has only 64 MiB VMEM per TensorCore)."""
    try:
        vmem_cap = pltpu.get_tpu_info().vmem_capacity_bytes
    except Exception:
        vmem_cap = 64 * 1024 * 1024                       # conservative fallback
    vmem_limit = min(48 * 1024 * 1024, (3 * vmem_cap) // 4)
    # Pipeline holds ~2 buffers each of the input and output block (~4x block)
    # plus partial-sum temps; keep headroom inside vmem_limit.
    max_block = max(512 * 1024, vmem_limit // 6)
    return max_block, vmem_limit


def _round_up(a, b):
    return ((a + b - 1) // b) * b


def batchnorm1d_forward(x, weight, bias, eps=1e-5, max_block_bytes=None,
                        vmem_limit_bytes=None):
    """x: (N, C, L); weight/bias: (C,). Returns (out, kl) like the module."""
    n, c, l = x.shape
    inv_m = 1.0 / float(n * l)

    default_block, default_limit = _default_budgets()
    if max_block_bytes is None:
        max_block_bytes = default_block
    if vmem_limit_bytes is None:
        vmem_limit_bytes = default_limit

    itemsize = jnp.dtype(x.dtype).itemsize
    sub = {4: 8, 2: 16, 1: 32}.get(itemsize, 8)           # sublane granularity

    # weight/bias packed into one (C, 2) f32 array -> a single tiny per-step DMA.
    wb = jnp.stack([weight.astype(jnp.float32), bias.astype(jnp.float32)], axis=1)

    # TODO(synk): when L is small or not a multiple of 128 the lane axis is
    # under-utilized / partially masked; a lane-dense (C, N*L) layout path would
    # fix that at the cost of transpose passes outside the kernel.

    bytes_per_channel = n * l * itemsize
    max_tc = max_block_bytes // bytes_per_channel         # channels per block in budget

    def _params(sems):
        return pltpu.CompilerParams(dimension_semantics=sems,
                                    vmem_limit_bytes=vmem_limit_bytes)

    if c <= max_tc or max_tc >= sub:
        # ---- fused single-pass path: full (N, L) per channel tile fits ----
        if c <= max_tc:
            if c >= 2 * sub:
                # Split into 2 even channel tiles so the "parallel" axis can
                # feed both TensorCores on v7x (grid of 1 idles one core).
                tc = _round_up((c + 1) // 2, sub)
            else:
                tc = c                                    # full dim (always legal)
        else:
            tc = (max_tc // sub) * sub                    # sublane-aligned, in budget
        grid_c = pl.cdiv(c, tc)

        out = pl.pallas_call(
            functools.partial(_bn_fused_kernel, inv_m=inv_m, eps=eps),
            out_shape=jax.ShapeDtypeStruct((n, c, l), x.dtype),
            grid=(grid_c,),
            in_specs=[
                pl.BlockSpec((n, tc, l), lambda i: (0, i, 0)),
                pl.BlockSpec((tc, 2), lambda i: (i, 0)),
            ],
            out_specs=pl.BlockSpec((n, tc, l), lambda i: (0, i, 0)),
            compiler_params=_params(("parallel",)),
        )(x, wb)
        return out, 0

    # ---- two-phase path: even the minimum-legal channel tile over full L ----
    # ---- exceeds the budget, so also tile L in lane-aligned chunks.       ----
    tc = min(c, sub)
    tl = (max_block_bytes // (n * tc * itemsize)) // 128 * 128
    tl = min(max(128, tl), l)
    grid_c = pl.cdiv(c, tc)
    grid_l = pl.cdiv(l, tl)
    need_mask = (l % tl) != 0

    stats = pl.pallas_call(
        functools.partial(_bn_stats_kernel, inv_m=inv_m, eps=eps, tl=tl,
                          l_total=l, need_mask=need_mask),
        out_shape=jax.ShapeDtypeStruct((c, 2), jnp.float32),
        grid=(grid_c, grid_l),
        in_specs=[pl.BlockSpec((n, tc, tl), lambda i, j: (0, i, j))],
        out_specs=pl.BlockSpec((tc, 2), lambda i, j: (i, 0)),
        scratch_shapes=[pltpu.VMEM((tc, 1), jnp.float32),
                        pltpu.VMEM((tc, 1), jnp.float32)],
        compiler_params=_params(("parallel", "arbitrary")),
    )(x)

    out = pl.pallas_call(
        _bn_normalize_kernel,
        out_shape=jax.ShapeDtypeStruct((n, c, l), x.dtype),
        grid=(grid_c, grid_l),
        in_specs=[
            pl.BlockSpec((n, tc, tl), lambda i, j: (0, i, j)),
            pl.BlockSpec((tc, 2), lambda i, j: (i, 0)),
            pl.BlockSpec((tc, 2), lambda i, j: (i, 0)),
        ],
        out_specs=pl.BlockSpec((n, tc, tl), lambda i, j: (0, i, j)),
        compiler_params=_params(("parallel", "parallel")),
    )(x, stats, wb)
    return out, 0


# --------------------------------- reference ---------------------------------


def _ref_bn(x, weight, bias, eps):
    c = x.shape[1]
    mean = jnp.mean(x, axis=(0, 2), keepdims=True)
    var = jnp.mean((x - mean) ** 2, axis=(0, 2), keepdims=True)
    return (x - mean) / jnp.sqrt(var + eps) * weight.reshape(1, c, 1) + bias.reshape(1, c, 1)


if __name__ == "__main__":
    key = jax.random.PRNGKey(0)
    k1, k2, k3, k4, k5, k6 = jax.random.split(key, 6)
    eps = 1e-5

    # case 1: small shapes consistent with the module's 3D (N, C, L) input
    N, C, L = 2, 4, 16
    x = jax.random.normal(k1, (N, C, L), dtype=jnp.float32)
    w = jax.random.uniform(k2, (C,), dtype=jnp.float32)   # reset_parameters(): weight ~ U(0,1)
    b = jnp.zeros((C,), dtype=jnp.float32)                # bias = 0
    out, kl = batchnorm1d_forward(x, w, b, eps=eps)
    out = jax.block_until_ready(out)
    assert kl == 0
    assert jnp.allclose(out, _ref_bn(x, w, b, eps), atol=1e-4, rtol=1e-4), "mismatch (small)"

    # case 2: fused path with the channel axis split across 2 tiles
    # (megacore-friendly) and a partial last channel block
    N2, C2, L2 = 4, 40, 128
    x2 = jax.random.normal(k3, (N2, C2, L2), dtype=jnp.float32)
    w2 = jax.random.uniform(k4, (C2,), dtype=jnp.float32)
    b2 = jnp.zeros((C2,), dtype=jnp.float32)
    out2, _ = batchnorm1d_forward(x2, w2, b2, eps=eps)
    out2 = jax.block_until_ready(out2)
    assert jnp.allclose(out2, _ref_bn(x2, w2, b2, eps), atol=1e-4, rtol=1e-4), "mismatch (split)"

    # case 3: two-phase path (tiny budget forces the L-tiled stats + normalize
    # split), with partial channel blocks and a masked partial L block
    N3, C3, L3 = 2, 12, 400
    x3 = jax.random.normal(k5, (N3, C3, L3), dtype=jnp.float32)
    w3 = jax.random.uniform(k6, (C3,), dtype=jnp.float32)
    b3 = jnp.zeros((C3,), dtype=jnp.float32)
    out3, _ = batchnorm1d_forward(x3, w3, b3, eps=eps, max_block_bytes=8 * 1024)
    out3 = jax.block_until_ready(out3)
    assert jnp.allclose(out3, _ref_bn(x3, w3, b3, eps), atol=1e-4, rtol=1e-4), "mismatch (two-phase)"

    # TODO(synk): running_mean/running_var/num_batches_tracked buffer updates are
    # stateful PyTorch side effects; training-mode output does not depend on them.
    print("KERNEL_OK")
</pallas_src>

<mosaic_0001>
module attributes {stable_mosaic.version = 11 : i64} {
  func.func @_bn_fused_kernel(%arg0: i32, %arg1: memref<2x4x16xf32, #tpu.memory_space<vmem>>, %arg2: memref<4x2xf32, #tpu.memory_space<vmem>>, %arg3: memref<2x4x16xf32, #tpu.memory_space<vmem>>) attributes {dimension_semantics = [#tpu.dimension_semantics<parallel>], iteration_bounds = array<i64: 1>, scalar_prefetch = 0 : i64, scratch_operands = 0 : i64, tpu.core_type = #tpu.core_type<tc>, window_params = [{transform_indices = @transform_0, window_bounds = array<i64: 2, 4, 16>}, {transform_indices = @transform_1, window_bounds = array<i64: 4, 2>}, {transform_indices = @transform_2, window_bounds = array<i64: 2, 4, 16>}]} {
    %c0 = arith.constant 0 : index
    %c0_0 = arith.constant 0 : index
    %c0_1 = arith.constant 0 : index
    %0 = vector.load %arg1[%c0, %c0_0, %c0_1] : memref<2x4x16xf32, #tpu.memory_space<vmem>>, vector<2x4x16xf32>
    %cst = arith.constant dense<0.000000e+00> : vector<4x16xf32>
    %1 = vector.multi_reduction <add>, %0, %cst [0] : vector<2x4x16xf32> to vector<4x16xf32>
    %2 = arith.mulf %0, %0 : vector<2x4x16xf32>
    %cst_2 = arith.constant dense<0.000000e+00> : vector<4x16xf32>
    %3 = vector.multi_reduction <add>, %2, %cst_2 [0] : vector<2x4x16xf32> to vector<4x16xf32>
    %cst_3 = arith.constant dense<0.000000e+00> : vector<4xf32>
    %4 = vector.multi_reduction <add>, %1, %cst_3 [1] : vector<4x16xf32> to vector<4xf32>
    %5 = vector.shape_cast %4 : vector<4xf32> to vector<4x1xf32>
    %cst_4 = arith.constant dense<0.000000e+00> : vector<4xf32>
    %6 = vector.multi_reduction <add>, %3, %cst_4 [1] : vector<4x16xf32> to vector<4xf32>
    %7 = vector.shape_cast %6 : vector<4xf32> to vector<4x1xf32>
    %cst_5 = arith.constant 3.125000e-02 : f32
    %8 = vector.broadcast %cst_5 : f32 to vector<4x1xf32>
    %9 = arith.mulf %5, %8 : vector<4x1xf32>
    %cst_6 = arith.constant 3.125000e-02 : f32
    %10 = vector.broadcast %cst_6 : f32 to vector<4x1xf32>
    %11 = arith.mulf %7, %10 : vector<4x1xf32>
    %12 = arith.mulf %9, %9 : vector<4x1xf32>
    %13 = arith.subf %11, %12 : vector<4x1xf32>
    %cst_7 = arith.constant 0.000000e+00 : f32
    %14 = vector.broadcast %cst_7 : f32 to vector<4x1xf32>
    %15 = arith.maximumf %13, %14 : vector<4x1xf32>
    %cst_8 = arith.constant 9.99999974E-6 : f32
    %16 = vector.broadcast %cst_8 : f32 to vector<4x1xf32>
    %17 = arith.addf %15, %16 : vector<4x1xf32>
    %18 = math.rsqrt %17 : vector<4x1xf32>
    %c0_9 = arith.constant 0 : index
    %c0_10 = arith.constant 0 : index
    %19 = vector.load %arg2[%c0_9, %c0_10] : memref<4x2xf32, #tpu.memory_space<vmem>>, vector<4x1xf32>
    %20 = arith.mulf %19, %18 : vector<4x1xf32>
    %c0_11 = arith.constant 0 : index
    %c1 = arith.constant 1 : index
    %21 = vector.load %arg2[%c0_11, %c1] : memref<4x2xf32, #tpu.memory_space<vmem>>, vector<4x1xf32>
    %22 = arith.mulf %9, %20 : vector<4x1xf32>
    %23 = arith.subf %21, %22 : vector<4x1xf32>
    %c0_12 = arith.constant 0 : index
    %c0_13 = arith.constant 0 : index
    %c0_14 = arith.constant 0 : index
    %24 = vector.load %arg1[%c0_12, %c0_13, %c0_14] : memref<2x4x16xf32, #tpu.memory_space<vmem>>, vector<2x4x16xf32>
    %25 = vector.shape_cast %20 : vector<4x1xf32> to vector<1x4x1xf32>
    %26 = vector.broadcast %25 : vector<1x4x1xf32> to vector<2x4x16xf32>
    %27 = arith.mulf %24, %26 : vector<2x4x16xf32>
    %28 = vector.shape_cast %23 : vector<4x1xf32> to vector<1x4x1xf32>
    %29 = vector.broadcast %28 : vector<1x4x1xf32> to vector<2x4x16xf32>
    %30 = arith.addf %27, %29 : vector<2x4x16xf32>
    %c0_15 = arith.constant 0 : index
    %c0_16 = arith.constant 0 : index
    %c0_17 = arith.constant 0 : index
    %31 = vector.load %arg3[%c0_15, %c0_16, %c0_17] : memref<2x4x16xf32, #tpu.memory_space<vmem>>, vector<2x4x16xf32>
    tpu.vector_store %arg3[%c0_15, %c0_16, %c0_17], %30 {strides = array<i32>} : memref<2x4x16xf32, #tpu.memory_space<vmem>>, vector<2x4x16xf32>,
    return
  }
  func.func @transform_0(%arg0: i32) -> (i32, i32, i32) {
    %c0_i32 = arith.constant 0 : i32
    %c0_i32_0 = arith.constant 0 : i32
    %c0_i32_1 = arith.constant 0 : i32
    return %c0_i32, %arg0, %c0_i32_0 : i32, i32, i32
  }
  func.func @transform_1(%arg0: i32) -> (i32, i32) {
    %c0_i32 = arith.constant 0 : i32
    %c0_i32_0 = arith.constant 0 : i32
    return %arg0, %c0_i32 : i32, i32
  }
  func.func @transform_2(%arg0: i32) -> (i32, i32, i32) {
    %c0_i32 = arith.constant 0 : i32
    %c0_i32_0 = arith.constant 0 : i32
    %c0_i32_1 = arith.constant 0 : i32
    return %c0_i32, %arg0, %c0_i32_0 : i32, i32, i32
  }
}

</mosaic_0001>

<bundles_post_ra>
// kernel: tpu_custom_call.1
= control target key start
LH: loop header
LB: loop body
LE: loop exit
PB: predicated region body
PF: predicated region fallthrough
CT: control target
= control target key end

     0   :  { %7 = vsyncpa [#allocation3], 0  ;;  %s213_s0 = inlined_call_operand.hbm [shape: f32[2,4,16], index: 0, kind: input, shape index: {}]   ;;  %s214_s1 = inlined_call_operand.vmem [shape: f32[4,2], index: 1, kind: input, shape index: {}]   ;;  %s215_s2 = inlined_call_operand.hbm [shape: f32[2,4,16], index: 2, kind: output, shape index: {}]  }
   0x1   :  { %8 = vsyncpa [#allocation4], 0  ;;  %s150_s9 = smov [#allocation2]   ;;  %s102_s13 = scalar_lea.hbm %s213_s0, 128 }
   0x2   :  { %s14_s10 = sshll.u32 %s150_s9, 4  ;;  %p103_p0 = scmp.ne.s32.totalorder %s213_s0, %s102_s13  ;;  %s15_s10 = int_to_ptr.vmem [resolvable:$true] %s14_s10 }
   0x3   :  { %p106_p1 = scmp.lt.u32.totalorder %s102_s13, %s213_s0 }
   0x5   :  { %p108_p2 = pnand %p106_p1, %p103_p0 }
   0x7   :  { %111 = shalt.err (!%p108_p2)
}
   0x8   :  { %s112_s18 = scalar_lea.vmem %s15_s10, 128  ;;  %p117_p4 = scmp.lt.s32.totalorder %s15_s10, %s15_s10 }
   0x9   :  { %p113_p3 = scmp.ne.s32.totalorder %s15_s10, %s112_s18  ;;  %p118_p5 = scmp.lt.s32.totalorder %s112_s18, %s112_s18 }
   0xb   :  { %p119_p6 = por %p118_p5, %p117_p4 }
   0xd   :  { %p120_p7 = pnand %p119_p6, %p113_p3 }
   0xf   :  { %123 = shalt.err (!%p120_p7)
}
  0x10   :  { %s151_s19 = smov 64   ;;  %s152_s20 = smov 4  }
  0x11   :  { %20 = dma.hbm_to_vmem [thread:$0]  %s213_s0, 128, %s15_s10, [#allocation3], %s151_s19, %s151_s19, %s152_s20  }
  0x12   :  { %146 = dma.done.wait [#allocation3], 128  }
  0x13   :  { %147 = vsyncadd [#allocation3], 4294967168  ;;  %vm28_vm0 = vcmask 125952   ;;  %v26_v0 = vld [vmem:[#allocation2] sm:$0xf]  ;;  %v153_v12 = vmov 0  }
  0x14   :  { %v27_v1 = vld [vmem:[#allocation2 + $0x4] sm:$0xf]  ;;  %v29_v2 = vsel %vm28_vm0, %v26_v0, 0.0  ;;  %v32_v4 = vmul.f32 %v26_v0, %v26_v0  ;;  %98 = vset.pattern.permute.xlu1 %v153_v12  ;;  %v154_v21 = vmov 1   ;;  %v50_v22 = vld [vmem:[%s214_s1] sm:$0xf] }
  0x15   :  { %v30_v3 = vsel %vm28_vm0, %v27_v1, 0.0  ;;  %v33_v5 = vmul.f32 %v27_v1, %v27_v1  ;;  %99 = vset.pattern.permute.xlu0 %v154_v21  ;;  %s155_s24 = smov 1   ;;  %s156_s25 = smov [#allocation5]  }
  0x16   :  { %v31_v6 = vadd.f32 %v30_v3, %v29_v2  ;;  %v34_v7 = vsel %vm28_vm0, %v32_v4, 0.0  ;;  %s79_s26 = sshll.u32 %s156_s25, 4  ;;  %s80_s26 = int_to_ptr.vmem [resolvable:$true] %s79_s26 }
  0x17   :  { %v35_v8 = vsel %vm28_vm0, %v33_v5, 0.0  ;;  %s124_s1 = scalar_lea.vmem %s80_s26, 128  ;;  %p129_p9 = scmp.lt.s32.totalorder %s80_s26, %s80_s26 }
  0x18   :  { %v37_v9 = vsel %vm28_vm0, %v31_v6, 0.0  ;;  %v36_v10 = vadd.f32 %v35_v8, %v34_v7  ;;  %p125_p8 = scmp.ne.s32.totalorder %s80_s26, %s124_s1  ;;  %p130_p10 = scmp.lt.s32.totalorder %s124_s1, %s124_s1 }
  0x19   :  { %38 = vadd.xlane.f32.xlu0 %v37_v9 }
  0x1a   :  { %v40_v11 = vsel %vm28_vm0, %v36_v10, 0.0  ;;  %p131_p11 = por %p130_p10, %p129_p9 }
  0x1c   :  { %p132_p12 = pnand %p131_p11, %p125_p8 }
  0x1d   :  { %41 = vadd.xlane.f32.xlu0 %v40_v11 }
  0xa6   :  { %v39_v13 = vpop.xlane.xlu0 %38 }
  0xa7   :  { %v43_v14 = vmul.f32 0.03125, %v39_v13 }
  0xa9   :  { %v45_v16 = vmul.f32 %v43_v14, %v43_v14 }
  0xaa   :  { %v42_v15 = vpop.xlane.xlu0 %41 }
  0xab   :  { %v44_v17 = vmul.f32 0.03125, %v42_v15 }
  0xad   :  { %v46_v18 = vsub.f32 %v44_v17, %v45_v16 }
  0xaf   :  { %v47_v19 = vmax.f32 %v46_v18, 0.0 }
  0xb1   :  { %v48_v20 = vadd.f32 1e-05, %v47_v19 }
  0xb3   :  { %100 = vrsqrt.f32 %v48_v20 }
  0xbd   :  { %v101_v23 = vpop.eup %100 }
  0xbe   :  { %v51_v24 = vmul.f32 %v101_v23, %v50_v22 }
  0xc0   :  { %v52_v25 = vmul.f32 %v51_v24, %v43_v14 }
  0xc2   :  { %54 = vrot.lane.b32.xlu1 %v52_v25, %s155_s24 }
  0xc6   :  { %60 = vperm.xlu1 %98, %v51_v24  }
 0x134   :  { %v55_v26 = vpop.permute.xlu1 %54 }
 0x135   :  { %v57_v27 = vsub.f32 %v50_v22, %v55_v26 }
 0x137   :  { %67 = vperm.xlu0 %99, %v57_v27  }
 0x145   :  { %v61_v28 = vpop.permute.xlu1 %60 }
 0x146   :  { %v63_v29 = vmul.f32 %v61_v28, %v26_v0  ;;  %v64_v30 = vmul.f32 %v61_v28, %v27_v1 }
 0x1b6   :  { %v68_v31 = vpop.permute.xlu0 %67 }
 0x1b7   :  { %v70_v32 = vadd.f32 %v68_v31, %v63_v29  ;;  %v71_v33 = vadd.f32 %v68_v31, %v64_v30 }
 0x1b9   :  { %72 = vst.msk [vmem:[#allocation5] sm:$0xf] %vm28_vm0, %v70_v32  ;;  %73 = vst.msk [vmem:[#allocation5 + $0x4] sm:$0xf] %vm28_vm0, %v71_v33 }
 0x1ba   :  { %135 = shalt.err (!%p132_p12)
}
 0x1bb   :  { %s136_s29 = scalar_lea.hbm %s215_s2, 128 }
 0x1bc   :  { %p137_p13 = scmp.ne.s32.totalorder %s215_s2, %s136_s29  ;;  %p140_p0 = scmp.lt.u32.totalorder %s136_s29, %s215_s2 }
 0x1be   :  { %p142_p1 = pnand %p140_p0, %p137_p13 }
 0x1c0   :  { %145 = shalt.err (!%p142_p1)
}
 0x1c1   :  { %85 = dma.vmem_to_hbm [thread:$0]  %s80_s26, 128, %s215_s2, [#allocation4], %s151_s19, %s151_s19, %s152_s20  }
 0x1c2   :  { %148 = dma.done.wait [#allocation4], 128  }
 0x1c3   :  { %149 = vsyncadd [#allocation4], 4294967168 }
 0x1c4   :  { %89 = vsyncpa [#allocation3], 1 }
 0x1c5   :  { %90 = vsyncpa [#allocation4], 1 }

</bundles_post_ra>
